<compile_context>
chip_gen: v7x
topology: tpu7x:2x2x1
jax: 0.10.0
libtpu: 0.0.40
codegen_flags: <defaults>
</compile_context>

<pallas_src>
import jax
import jax.numpy as jnp
from jax.experimental import pallas as pl
from jax.experimental.pallas import tpu as pltpu

NUM_LAYERS = 10  # gc1 .. gc10


def gcn_collapsed_kernel(x_ref, adj_ref, p_ref, c_ref, out_ref):
    """Fused, linearity-collapsed 10-layer GCN.

    x_ref   : (N, nfeat)              f32  node features
    adj_ref : (N, N)                  f32  (normalized) adjacency
    p_ref   : (nfeat, nout)           bf16 W_0 @ ... @ W_9 (f32 product, cast once)
    c_ref   : (NUM_LAYERS, N, nout)   f32  row-replicated b_l @ (W_{l+1}..W_9)
    out_ref : (N, nout)               f32
    """
    adj_bf = adj_ref[...].astype(jnp.bfloat16)          # cast once, reused 10x

    # y = x @ P   (bf16 operands, f32 accumulation on the MXU)
    y = jnp.dot(x_ref[...].astype(jnp.bfloat16), p_ref[...],
                preferred_element_type=jnp.float32)

    # TODO(synk): F.dropout between layers is identity in eval mode; no RNG
    # (training-mode dropout) path is implemented here.
    for l in range(NUM_LAYERS):
        # y <- adj @ y + c_l   (f32 accumulate, f32 bias add, one bf16 cast/layer)
        y = jnp.dot(adj_bf, y.astype(jnp.bfloat16),
                    preferred_element_type=jnp.float32) + c_ref[l]

    out_ref[...] = y


def _collapse_params(weights, biases, n):
    """Exact f32 collapse of the linear layer stack (done once at init).

    Returns:
      p : (nfeat, nout) bf16   = W_0 @ ... @ W_9
      c : (NUM_LAYERS, n, nout) f32, c[l] = rows replicated of b_l @ (W_{l+1}..W_9)
    """
    nout = weights[-1].shape[1]
    # Suffix products S_k = W_k @ W_{k+1} @ ... @ W_9, with S_10 = I.
    suffix = [None] * (NUM_LAYERS + 1)
    suffix[NUM_LAYERS] = jnp.eye(nout, dtype=jnp.float32)
    for l in range(NUM_LAYERS - 1, -1, -1):
        suffix[l] = weights[l].astype(jnp.float32) @ suffix[l + 1]

    p = suffix[0]                                                   # (nfeat, nout)
    c_rows = [biases[l].astype(jnp.float32) @ suffix[l + 1]         # (nout,)
              for l in range(NUM_LAYERS)]
    c = jnp.stack([jnp.broadcast_to(r, (n, nout)) for r in c_rows]) # (L, n, nout)
    return p.astype(jnp.bfloat16), c


def make_gcn_forward(weights, biases, n):
    """Collapse parameters once; return jitted forward(x, adj) -> (n, nout)."""
    nout = weights[-1].shape[1]
    p, c = _collapse_params(weights, biases, n)   # constants, computed once

    call = pl.pallas_call(
        gcn_collapsed_kernel,
        out_shape=jax.ShapeDtypeStruct((n, nout), jnp.float32),
        in_specs=[
            pl.BlockSpec(memory_space=pltpu.MemorySpace.VMEM),  # x
            pl.BlockSpec(memory_space=pltpu.MemorySpace.VMEM),  # adj
            pl.BlockSpec(memory_space=pltpu.MemorySpace.VMEM),  # P
            pl.BlockSpec(memory_space=pltpu.MemorySpace.VMEM),  # C
        ],
        out_specs=pl.BlockSpec(memory_space=pltpu.MemorySpace.VMEM),
    )

    @jax.jit
    def forward(x, adj):
        # Full-array VMEM blocks: no padding or output slicing XLA ops needed.
        return call(x.astype(jnp.float32), adj.astype(jnp.float32), p, c)

    return forward


def gcn_reference(x, adj, weights, biases):
    """Pure-JAX f32 reference (layer-by-layer, same math as PyTorch eval mode)."""
    h = x
    for w, b in zip(weights, biases):
        h = adj @ (h @ w) + b
    return h


def init_params(key, nfeat, nout):
    """Deterministic init mimicking pygcn's GraphConvolution.reset_parameters:
    stdv = 1/sqrt(out_features); weight, bias ~ U(-stdv, stdv)."""
    dims = [nfeat, 12, 11, 10, 9, 8, 7, 6, 5, 4, nout]
    weights, biases = [], []
    for l in range(NUM_LAYERS):
        fin, fout = dims[l], dims[l + 1]
        key, kw, kb = jax.random.split(key, 3)
        stdv = 1.0 / jnp.sqrt(jnp.float32(fout))
        weights.append(jax.random.uniform(kw, (fin, fout), jnp.float32,
                                          minval=-stdv, maxval=stdv))
        biases.append(jax.random.uniform(kb, (fout,), jnp.float32,
                                         minval=-stdv, maxval=stdv))
    return weights, biases


if __name__ == "__main__":
    key = jax.random.PRNGKey(0)

    N = 16       # number of graph nodes
    NFEAT = 16   # input feature dim
    NOUT = 3     # output classes

    key, kx, ka = jax.random.split(key, 3)
    x = jax.random.normal(kx, (N, NFEAT), jnp.float32)

    # Small symmetric, row-normalized adjacency (typical GCN preprocessing).
    a = (jax.random.uniform(ka, (N, N)) > 0.7).astype(jnp.float32)
    a = jnp.maximum(a, a.T) + jnp.eye(N, dtype=jnp.float32)
    adj = a / jnp.sum(a, axis=1, keepdims=True)

    weights, biases = init_params(key, NFEAT, NOUT)

    forward = make_gcn_forward(weights, biases, n=N)
    out = jax.block_until_ready(forward(x, adj))

    ref = gcn_reference(x, adj, weights, biases)
    assert out.shape == (N, NOUT), out.shape
    # Only 11 bf16-operand matmuls remain (weight/bias products are exact f32
    # at init), so error is well under the 3e-2 tolerance used previously.
    assert jnp.allclose(out, ref, atol=3e-2, rtol=3e-2), (
        float(jnp.max(jnp.abs(out - ref))))

    print("KERNEL_OK")
</pallas_src>

<mosaic_0001>
module attributes {stable_mosaic.version = 11 : i64} {
  func.func @gcn_collapsed_kernel(%arg0: memref<16x16xf32, #tpu.memory_space<vmem>>, %arg1: memref<16x16xf32, #tpu.memory_space<vmem>>, %arg2: memref<16x3xbf16, #tpu.memory_space<vmem>>, %arg3: memref<10x16x3xf32, #tpu.memory_space<vmem>>, %arg4: memref<16x3xf32, #tpu.memory_space<vmem>>) attributes {dimension_semantics = [], scalar_prefetch = 0 : i64, scratch_operands = 0 : i64, tpu.core_type = #tpu.core_type<tc>} {
    %c0 = arith.constant 0 : index
    %c0_0 = arith.constant 0 : index
    %0 = vector.load %arg1[%c0, %c0_0] : memref<16x16xf32, #tpu.memory_space<vmem>>, vector<16x16xf32>
    %1 = arith.truncf %0 : vector<16x16xf32> to vector<16x16xbf16>
    %c0_1 = arith.constant 0 : index
    %c0_2 = arith.constant 0 : index
    %2 = vector.load %arg0[%c0_1, %c0_2] : memref<16x16xf32, #tpu.memory_space<vmem>>, vector<16x16xf32>
    %3 = arith.truncf %2 : vector<16x16xf32> to vector<16x16xbf16>
    %c0_3 = arith.constant 0 : index
    %c0_4 = arith.constant 0 : index
    %4 = vector.load %arg2[%c0_3, %c0_4] : memref<16x3xbf16, #tpu.memory_space<vmem>>, vector<16x3xbf16>
    %cst = arith.constant dense<0.000000e+00> : vector<16x3xf32>
    %5 = tpu.matmul %3, %4, %cst {dimension_numbers = #tpu.dot_dimension_numbers<[1], [0], [0], [1], [0, 0, 1, 1], [], []>} : vector<16x16xbf16>, vector<16x3xbf16>, vector<16x3xf32> -> vector<16x3xf32>
    %6 = arith.truncf %5 : vector<16x3xf32> to vector<16x3xbf16>
    %cst_5 = arith.constant dense<0.000000e+00> : vector<16x3xf32>
    %7 = tpu.matmul %1, %6, %cst_5 {dimension_numbers = #tpu.dot_dimension_numbers<[1], [0], [0], [1], [0, 0, 1, 1], [], []>} : vector<16x16xbf16>, vector<16x3xbf16>, vector<16x3xf32> -> vector<16x3xf32>
    %c0_6 = arith.constant 0 : index
    %c0_7 = arith.constant 0 : index
    %c0_8 = arith.constant 0 : index
    %8 = vector.load %arg3[%c0_6, %c0_7, %c0_8] : memref<10x16x3xf32, #tpu.memory_space<vmem>>, vector<1x16x3xf32>
    %9 = vector.shape_cast %8 : vector<1x16x3xf32> to vector<16x3xf32>
    %10 = arith.addf %7, %9 : vector<16x3xf32>
    %11 = arith.truncf %10 : vector<16x3xf32> to vector<16x3xbf16>
    %cst_9 = arith.constant dense<0.000000e+00> : vector<16x3xf32>
    %12 = tpu.matmul %1, %11, %cst_9 {dimension_numbers = #tpu.dot_dimension_numbers<[1], [0], [0], [1], [0, 0, 1, 1], [], []>} : vector<16x16xbf16>, vector<16x3xbf16>, vector<16x3xf32> -> vector<16x3xf32>
    %c1 = arith.constant 1 : index
    %c0_10 = arith.constant 0 : index
    %c0_11 = arith.constant 0 : index
    %13 = vector.load %arg3[%c1, %c0_10, %c0_11] : memref<10x16x3xf32, #tpu.memory_space<vmem>>, vector<1x16x3xf32>
    %14 = vector.shape_cast %13 : vector<1x16x3xf32> to vector<16x3xf32>
    %15 = arith.addf %12, %14 : vector<16x3xf32>
    %16 = arith.truncf %15 : vector<16x3xf32> to vector<16x3xbf16>
    %cst_12 = arith.constant dense<0.000000e+00> : vector<16x3xf32>
    %17 = tpu.matmul %1, %16, %cst_12 {dimension_numbers = #tpu.dot_dimension_numbers<[1], [0], [0], [1], [0, 0, 1, 1], [], []>} : vector<16x16xbf16>, vector<16x3xbf16>, vector<16x3xf32> -> vector<16x3xf32>
    %c2 = arith.constant 2 : index
    %c0_13 = arith.constant 0 : index
    %c0_14 = arith.constant 0 : index
    %18 = vector.load %arg3[%c2, %c0_13, %c0_14] : memref<10x16x3xf32, #tpu.memory_space<vmem>>, vector<1x16x3xf32>
    %19 = vector.shape_cast %18 : vector<1x16x3xf32> to vector<16x3xf32>
    %20 = arith.addf %17, %19 : vector<16x3xf32>
    %21 = arith.truncf %20 : vector<16x3xf32> to vector<16x3xbf16>
    %cst_15 = arith.constant dense<0.000000e+00> : vector<16x3xf32>
    %22 = tpu.matmul %1, %21, %cst_15 {dimension_numbers = #tpu.dot_dimension_numbers<[1], [0], [0], [1], [0, 0, 1, 1], [], []>} : vector<16x16xbf16>, vector<16x3xbf16>, vector<16x3xf32> -> vector<16x3xf32>
    %c3 = arith.constant 3 : index
    %c0_16 = arith.constant 0 : index
    %c0_17 = arith.constant 0 : index
    %23 = vector.load %arg3[%c3, %c0_16, %c0_17] : memref<10x16x3xf32, #tpu.memory_space<vmem>>, vector<1x16x3xf32>
    %24 = vector.shape_cast %23 : vector<1x16x3xf32> to vector<16x3xf32>
    %25 = arith.addf %22, %24 : vector<16x3xf32>
    %26 = arith.truncf %25 : vector<16x3xf32> to vector<16x3xbf16>
    %cst_18 = arith.constant dense<0.000000e+00> : vector<16x3xf32>
    %27 = tpu.matmul %1, %26, %cst_18 {dimension_numbers = #tpu.dot_dimension_numbers<[1], [0], [0], [1], [0, 0, 1, 1], [], []>} : vector<16x16xbf16>, vector<16x3xbf16>, vector<16x3xf32> -> vector<16x3xf32>
    %c4 = arith.constant 4 : index
    %c0_19 = arith.constant 0 : index
    %c0_20 = arith.constant 0 : index
    %28 = vector.load %arg3[%c4, %c0_19, %c0_20] : memref<10x16x3xf32, #tpu.memory_space<vmem>>, vector<1x16x3xf32>
    %29 = vector.shape_cast %28 : vector<1x16x3xf32> to vector<16x3xf32>
    %30 = arith.addf %27, %29 : vector<16x3xf32>
    %31 = arith.truncf %30 : vector<16x3xf32> to vector<16x3xbf16>
    %cst_21 = arith.constant dense<0.000000e+00> : vector<16x3xf32>
    %32 = tpu.matmul %1, %31, %cst_21 {dimension_numbers = #tpu.dot_dimension_numbers<[1], [0], [0], [1], [0, 0, 1, 1], [], []>} : vector<16x16xbf16>, vector<16x3xbf16>, vector<16x3xf32> -> vector<16x3xf32>
    %c5 = arith.constant 5 : index
    %c0_22 = arith.constant 0 : index
    %c0_23 = arith.constant 0 : index
    %33 = vector.load %arg3[%c5, %c0_22, %c0_23] : memref<10x16x3xf32, #tpu.memory_space<vmem>>, vector<1x16x3xf32>
    %34 = vector.shape_cast %33 : vector<1x16x3xf32> to vector<16x3xf32>
    %35 = arith.addf %32, %34 : vector<16x3xf32>
    %36 = arith.truncf %35 : vector<16x3xf32> to vector<16x3xbf16>
    %cst_24 = arith.constant dense<0.000000e+00> : vector<16x3xf32>
    %37 = tpu.matmul %1, %36, %cst_24 {dimension_numbers = #tpu.dot_dimension_numbers<[1], [0], [0], [1], [0, 0, 1, 1], [], []>} : vector<16x16xbf16>, vector<16x3xbf16>, vector<16x3xf32> -> vector<16x3xf32>
    %c6 = arith.constant 6 : index
    %c0_25 = arith.constant 0 : index
    %c0_26 = arith.constant 0 : index
    %38 = vector.load %arg3[%c6, %c0_25, %c0_26] : memref<10x16x3xf32, #tpu.memory_space<vmem>>, vector<1x16x3xf32>
    %39 = vector.shape_cast %38 : vector<1x16x3xf32> to vector<16x3xf32>
    %40 = arith.addf %37, %39 : vector<16x3xf32>
    %41 = arith.truncf %40 : vector<16x3xf32> to vector<16x3xbf16>
    %cst_27 = arith.constant dense<0.000000e+00> : vector<16x3xf32>
    %42 = tpu.matmul %1, %41, %cst_27 {dimension_numbers = #tpu.dot_dimension_numbers<[1], [0], [0], [1], [0, 0, 1, 1], [], []>} : vector<16x16xbf16>, vector<16x3xbf16>, vector<16x3xf32> -> vector<16x3xf32>
    %c7 = arith.constant 7 : index
    %c0_28 = arith.constant 0 : index
    %c0_29 = arith.constant 0 : index
    %43 = vector.load %arg3[%c7, %c0_28, %c0_29] : memref<10x16x3xf32, #tpu.memory_space<vmem>>, vector<1x16x3xf32>
    %44 = vector.shape_cast %43 : vector<1x16x3xf32> to vector<16x3xf32>
    %45 = arith.addf %42, %44 : vector<16x3xf32>
    %46 = arith.truncf %45 : vector<16x3xf32> to vector<16x3xbf16>
    %cst_30 = arith.constant dense<0.000000e+00> : vector<16x3xf32>
    %47 = tpu.matmul %1, %46, %cst_30 {dimension_numbers = #tpu.dot_dimension_numbers<[1], [0], [0], [1], [0, 0, 1, 1], [], []>} : vector<16x16xbf16>, vector<16x3xbf16>, vector<16x3xf32> -> vector<16x3xf32>
    %c8 = arith.constant 8 : index
    %c0_31 = arith.constant 0 : index
    %c0_32 = arith.constant 0 : index
    %48 = vector.load %arg3[%c8, %c0_31, %c0_32] : memref<10x16x3xf32, #tpu.memory_space<vmem>>, vector<1x16x3xf32>
    %49 = vector.shape_cast %48 : vector<1x16x3xf32> to vector<16x3xf32>
    %50 = arith.addf %47, %49 : vector<16x3xf32>
    %51 = arith.truncf %50 : vector<16x3xf32> to vector<16x3xbf16>
    %cst_33 = arith.constant dense<0.000000e+00> : vector<16x3xf32>
    %52 = tpu.matmul %1, %51, %cst_33 {dimension_numbers = #tpu.dot_dimension_numbers<[1], [0], [0], [1], [0, 0, 1, 1], [], []>} : vector<16x16xbf16>, vector<16x3xbf16>, vector<16x3xf32> -> vector<16x3xf32>
    %c9 = arith.constant 9 : index
    %c0_34 = arith.constant 0 : index
    %c0_35 = arith.constant 0 : index
    %53 = vector.load %arg3[%c9, %c0_34, %c0_35] : memref<10x16x3xf32, #tpu.memory_space<vmem>>, vector<1x16x3xf32>
    %54 = vector.shape_cast %53 : vector<1x16x3xf32> to vector<16x3xf32>
    %55 = arith.addf %52, %54 : vector<16x3xf32>
    %c0_36 = arith.constant 0 : index
    %c0_37 = arith.constant 0 : index
    %56 = vector.load %arg4[%c0_36, %c0_37] : memref<16x3xf32, #tpu.memory_space<vmem>>, vector<16x3xf32>
    tpu.vector_store %arg4[%c0_36, %c0_37], %55 {strides = array<i32>} : memref<16x3xf32, #tpu.memory_space<vmem>>, vector<16x3xf32>,
    return
  }
}

</mosaic_0001>

<bundles_post_ra>
// kernel: forward.1
= control target key start
LH: loop header
LB: loop body
LE: loop exit
PB: predicated region body
PF: predicated region fallthrough
CT: control target
= control target key end

     0   :  { %9 = vsyncpa [#allocation3], 0  ;;  %s906_s0 = inlined_call_operand.hbm [shape: f32[16,16], index: 0, kind: input, shape index: {}]   ;;  %s907_s1 = inlined_call_operand.hbm [shape: f32[16,16], index: 1, kind: input, shape index: {}]   ;;  %s908_s2 = inlined_call_operand.vmem [shape: bf16[16,3], index: 2, kind: input, shape index: {}]   ;;  %s909_s3 = inlined_call_operand.hbm [shape: f32[10,16,3], index: 3, kind: input, shape index: {}]   ;;  %s910_s4 = inlined_call_operand.vmem [shape: f32[16,3], index: 4, kind: output, shape index: {}]  }
   0x1   :  { %10 = vsyncpa [#allocation5], 0  ;;  %s757_s15 = smov [#allocation4]   ;;  %s758_s17 = smov [#allocation2]  }
   0x2   :  { %s28_s16 = sshll.u32 %s757_s15, 4  ;;  %s16_s18 = sshll.u32 %s758_s17, 4  ;;  %s29_s16 = int_to_ptr.vmem [resolvable:$true] %s28_s16  ;;  %s789_s18 = int_to_ptr.vmem [resolvable:$true] %s16_s18 }
   0x3   :  { %s687_s21 = scalar_lea.hbm %s907_s1, 256 }
   0x4   :  { %p688_p0 = scmp.ne.s32.totalorder %s907_s1, %s687_s21  ;;  %p691_p1 = scmp.lt.u32.totalorder %s687_s21, %s907_s1 }
   0x6   :  { %p693_p2 = pnand %p691_p1, %p688_p0 }
   0x8   :  { %696 = shalt.err (!%p693_p2)
}
   0x9   :  { %s697_s26 = scalar_lea.vmem %s29_s16, 256  ;;  %p702_p4 = scmp.lt.s32.totalorder %s29_s16, %s29_s16 }
   0xa   :  { %p698_p3 = scmp.ne.s32.totalorder %s29_s16, %s697_s26  ;;  %p703_p5 = scmp.lt.s32.totalorder %s697_s26, %s697_s26 }
   0xc   :  { %p704_p6 = por %p703_p5, %p702_p4 }
   0xe   :  { %p705_p7 = pnand %p704_p6, %p698_p3 }
  0x10   :  { %708 = shalt.err (!%p705_p7)
}
  0x11   :  { %s759_s27 = smov 128   ;;  %s760_s28 = smov 8  }
  0x12   :  { %34 = dma.hbm_to_vmem [thread:$0]  %s907_s1, 256, %s29_s16, [#allocation5], %s759_s27, %s759_s27, %s760_s28  }
  0x13   :  { %s709_s7 = scalar_lea.hbm %s906_s0, 256 }
  0x14   :  { %p710_p8 = scmp.ne.s32.totalorder %s906_s0, %s709_s7  ;;  %p713_p9 = scmp.lt.u32.totalorder %s709_s7, %s906_s0 }
  0x16   :  { %p715_p10 = pnand %p713_p9, %p710_p8 }
  0x18   :  { %718 = shalt.err (!%p715_p10)
}
  0x19   :  { %s719_s12 = scalar_lea.vmem %s789_s18, 256  ;;  %p724_p12 = scmp.lt.s32.totalorder %s789_s18, %s789_s18 }
  0x1a   :  { %p720_p11 = scmp.ne.s32.totalorder %s789_s18, %s719_s12  ;;  %p725_p13 = scmp.lt.s32.totalorder %s719_s12, %s719_s12 }
  0x1c   :  { %p726_p0 = por %p725_p13, %p724_p12 }
  0x1e   :  { %p727_p1 = pnand %p726_p0, %p720_p11 }
  0x20   :  { %730 = shalt.err (!%p727_p1)
}
  0x21   :  { %22 = dma.hbm_to_vmem [thread:$0]  %s906_s0, 256, %s789_s18, [#allocation3], %s759_s27, %s759_s27, %s760_s28  }
  0x22   :  { %s761_s14 = smov [#allocation6]   ;;  %s731_s19 = scalar_lea.hbm %s909_s3, 2560 }
  0x23   :  { %s42_s15 = sshll.u32 %s761_s14, 4  ;;  %p732_p2 = scmp.ne.s32.totalorder %s909_s3, %s731_s19  ;;  %s43_s15 = int_to_ptr.vmem [resolvable:$true] %s42_s15 }
  0x24   :  { %p735_p3 = scmp.lt.u32.totalorder %s731_s19, %s909_s3 }
  0x26   :  { %p737_p4 = pnand %p735_p3, %p732_p2 }
  0x28   :  { %740 = shalt.err (!%p737_p4)
}
  0x29   :  { %s741_s24 = scalar_lea.vmem %s43_s15, 2560  ;;  %p746_p6 = scmp.lt.s32.totalorder %s43_s15, %s43_s15 }
  0x2a   :  { %p742_p5 = scmp.ne.s32.totalorder %s43_s15, %s741_s24  ;;  %p747_p7 = scmp.lt.s32.totalorder %s741_s24, %s741_s24 }
  0x2c   :  { %p748_p8 = por %p747_p7, %p746_p6 }
  0x2e   :  { %p749_p9 = pnand %p748_p8, %p742_p5 }
  0x30   :  { %752 = shalt.err (!%p749_p9)
}
  0x31   :  { %48 = dma.hbm_to_vmem [thread:$0]  %s909_s3, 2560, %s43_s15, [#allocation5], %s759_s27, %s759_s27, %s760_s28  }
  0x32   :  { %753 = dma.done.wait [#allocation3], 256  }
  0x33   :  { %754 = vsyncadd [#allocation3], 4294967040 }
  0x34   :  { %755 = dma.done.wait [#allocation5], 2816  }
  0x35   :  { %756 = vsyncadd [#allocation5], 4294964480  ;;  %v762_v0 = vmov 0.0   ;;  %vm763_vm0 = vmmov 0   ;;  %v686_v1 = vld [vmem:[%s908_s2] sm:$0xff]   ;;  %v63_v3 = vld [vmem:[#allocation2 + $0x8] sm:$0xff] }
  0x36   :  { %613 = vmatprep.subr.bf16.mxu0 %v762_v0  ;;  %615 = vmatprep.mubr.msk.bf16.mxu0 %vm763_vm0, %v762_v0  ;;  %v62_v2 = vld [vmem:[#allocation2] sm:$0xff]  ;;  %vm73_vm1 = vcmask 130048   ;;  %v59_v7 = vld [vmem:[#allocation4] sm:$0xff]  ;;  %v60_v8 = vld [vmem:[#allocation4 + $0x8] sm:$0xff]  ;;  %vm570_vm2 = vcmask 23552  }
  0x37   :  { %619 = vmatprep.subr.bf16.mxu1 %v762_v0  ;;  %621 = vmatprep.mubr.msk.bf16.mxu1 %vm763_vm0, %v762_v0  ;;  %v64_v4 = vpack.c.bf16 %v63_v3, %v62_v2  ;;  %v854_v12 = vpack.c.bf16 %v60_v8, %v59_v7  ;;  %v119_v13 = vld [vmem:[#allocation6] sm:$0xff]  ;;  %v120_v15 = vld [vmem:[#allocation6 + $0x8] sm:$0xff]  ;;  %v167_v22 = vld [vmem:[#allocation6 + $0x10] sm:$0xff] }
  0x38   :  { %614 = vmatpush3.bf16.msra.mxu0 %v686_v1  ;;  %v168_v24 = vld [vmem:[#allocation6 + $0x18] sm:$0xff]  ;;  %v212_v31 = vld [vmem:[#allocation6 + $0x20] sm:$0xff]  ;;  %v213_v33 = vld [vmem:[#allocation6 + $0x28] sm:$0xff] }
  0x39   :  { %625 = vmatprep.subr.bf16.mxu0 %v762_v0  ;;  %v257_v40 = vld [vmem:[#allocation6 + $0x30] sm:$0xff]  ;;  %v258_v42 = vld [vmem:[#allocation6 + $0x38] sm:$0xff]  ;;  %v302_v49 = vld [vmem:[#allocation6 + $0x40] sm:$0xff] }
  0x3a   :  { %v303_v51 = vld [vmem:[#allocation6 + $0x48] sm:$0xff]  ;;  %v347_v58 = vld [vmem:[#allocation6 + $0x50] sm:$0xff]  ;;  %v348_v60 = vld [vmem:[#allocation6 + $0x58] sm:$0xff] }
  0x3b   :  { %616 = vmatmul.mubr.msk.bf16.vlgmr.msra.gmra.mrb[0].mxu0 %vm73_vm1, %v64_v4  ;;  %v392_v4 = vld [vmem:[#allocation6 + $0x60] sm:$0xff] }
  0x3c   :  { %627 = vmatprep.mubr.msk.bf16.mxu0 %vm763_vm0, %v762_v0 }
 0x10e   :  { %v111_v5 = vpop.f32.mrb[0].mxu0 }
 0x10f   :  { %v617_v6 = vpop.f32.mrb[1].mxu0 }
 0x110   :  { %v114_v9 = vpop.f32.mrb[2].mxu0  ;;  %v393_v6 = vld [vmem:[#allocation6 + $0x68] sm:$0xff] }
 0x111   :  { %v118_v10 = vpack.c.bf16 %v114_v9, %v111_v5  ;;  %v618_v11 = vpop.f32.mrb[3].mxu0 }
 0x113   :  { %620 = vmatpush3.bf16.msra.mxu1 %v118_v10 }
 0x114   :  { %631 = vmatprep.subr.bf16.mxu1 %v762_v0 }
 0x116   :  { %622 = vmatmul.mubr.msk.bf16.vlgmr.msra.gmra.mrb[0].mxu1 %vm73_vm1, %v854_v12 }
 0x117   :  { %633 = vmatprep.mubr.msk.bf16.mxu1 %vm763_vm0, %v762_v0 }
 0x1e9   :  { %v158_v14 = vpop.f32.mrb[0].mxu1 }
 0x1ea   :  { %v623_v16 = vpop.f32.mrb[1].mxu1  ;;  %v159_v18 = vadd.f32 %v158_v14, %v119_v13  ;;  %v437_v14 = vld [vmem:[#allocation6 + $0x70] sm:$0xff] }
 0x1eb   :  { %v161_v17 = vpop.f32.mrb[2].mxu1  ;;  %v438_v16 = vld [vmem:[#allocation6 + $0x78] sm:$0xff] }
 0x1ec   :  { %v162_v19 = vadd.f32 %v161_v17, %v120_v15  ;;  %v624_v20 = vpop.f32.mrb[3].mxu1 }
 0x1ee   :  { %v165_v21 = vpack.c.bf16 %v162_v19, %v159_v18 }
 0x1f0   :  { %626 = vmatpush3.bf16.msra.mxu0 %v165_v21 }
 0x1f1   :  { %637 = vmatprep.subr.bf16.mxu0 %v762_v0 }
 0x1f3   :  { %628 = vmatmul.mubr.msk.bf16.vlgmr.msra.gmra.mrb[4].mxu0 %vm73_vm1, %v854_v12 }
 0x1f4   :  { %639 = vmatprep.mubr.msk.bf16.mxu0 %vm763_vm0, %v762_v0 }
 0x2c6   :  { %v203_v23 = vpop.f32.mrb[4].mxu0 }
 0x2c7   :  { %v629_v25 = vpop.f32.mrb[5].mxu0  ;;  %v204_v27 = vadd.f32 %v203_v23, %v167_v22  ;;  %v482_v23 = vld [vmem:[#allocation6 + $0x80] sm:$0xff] }
 0x2c8   :  { %v206_v26 = vpop.f32.mrb[6].mxu0  ;;  %v483_v25 = vld [vmem:[#allocation6 + $0x88] sm:$0xff] }
 0x2c9   :  { %v207_v28 = vadd.f32 %v206_v26, %v168_v24  ;;  %v630_v29 = vpop.f32.mrb[7].mxu0 }
 0x2cb   :  { %v210_v30 = vpack.c.bf16 %v207_v28, %v204_v27 }
 0x2cd   :  { %632 = vmatpush3.bf16.msra.mxu1 %v210_v30 }
 0x2ce   :  { %643 = vmatprep.subr.bf16.mxu1 %v762_v0 }
 0x2d0   :  { %634 = vmatmul.mubr.msk.bf16.vlgmr.msra.gmra.mrb[4].mxu1 %vm73_vm1, %v854_v12 }
 0x2d1   :  { %645 = vmatprep.mubr.msk.bf16.mxu1 %vm763_vm0, %v762_v0 }
 0x3a3   :  { %v248_v32 = vpop.f32.mrb[4].mxu1 }
 0x3a4   :  { %v635_v34 = vpop.f32.mrb[5].mxu1  ;;  %v249_v36 = vadd.f32 %v248_v32, %v212_v31  ;;  %v527_v31 = vld [vmem:[#allocation6 + $0x90] sm:$0xff] }
 0x3a5   :  { %v251_v35 = vpop.f32.mrb[6].mxu1 }
 0x3a6   :  { %v252_v37 = vadd.f32 %v251_v35, %v213_v33  ;;  %v636_v38 = vpop.f32.mrb[7].mxu1  ;;  %v528_v33 = vld [vmem:[#allocation6 + $0x98] sm:$0xff] }
 0x3a8   :  { %v255_v39 = vpack.c.bf16 %v252_v37, %v249_v36 }
 0x3aa   :  { %638 = vmatpush3.bf16.msra.mxu0 %v255_v39 }
 0x3ab   :  { %649 = vmatprep.subr.bf16.mxu0 %v762_v0 }
 0x3ad   :  { %640 = vmatmul.mubr.msk.bf16.vlgmr.msra.gmra.mrb[8].mxu0 %vm73_vm1, %v854_v12 }
 0x3ae   :  { %651 = vmatprep.mubr.msk.bf16.mxu0 %vm763_vm0, %v762_v0 }
 0x480   :  { %v293_v41 = vpop.f32.mrb[8].mxu0 }
 0x481   :  { %v641_v43 = vpop.f32.mrb[9].mxu0  ;;  %v294_v45 = vadd.f32 %v293_v41, %v257_v40 }
 0x482   :  { %v296_v44 = vpop.f32.mrb[10].mxu0 }
 0x483   :  { %v297_v46 = vadd.f32 %v296_v44, %v258_v42  ;;  %v642_v47 = vpop.f32.mrb[11].mxu0 }
 0x485   :  { %v300_v48 = vpack.c.bf16 %v297_v46, %v294_v45 }
 0x487   :  { %644 = vmatpush3.bf16.msra.mxu1 %v300_v48 }
 0x488   :  { %655 = vmatprep.subr.bf16.mxu1 %v762_v0 }
 0x48a   :  { %646 = vmatmul.mubr.msk.bf16.vlgmr.msra.gmra.mrb[8].mxu1 %vm73_vm1, %v854_v12 }
 0x48b   :  { %657 = vmatprep.mubr.msk.bf16.mxu1 %vm763_vm0, %v762_v0 }
 0x55d   :  { %v338_v50 = vpop.f32.mrb[8].mxu1 }
 0x55e   :  { %v647_v52 = vpop.f32.mrb[9].mxu1  ;;  %v339_v54 = vadd.f32 %v338_v50, %v302_v49 }
 0x55f   :  { %v341_v53 = vpop.f32.mrb[10].mxu1 }
 0x560   :  { %v342_v55 = vadd.f32 %v341_v53, %v303_v51  ;;  %v648_v56 = vpop.f32.mrb[11].mxu1 }
 0x562   :  { %v345_v57 = vpack.c.bf16 %v342_v55, %v339_v54 }
 0x564   :  { %650 = vmatpush3.bf16.msra.mxu0 %v345_v57 }
 0x565   :  { %661 = vmatprep.subr.bf16.mxu0 %v762_v0 }
 0x567   :  { %652 = vmatmul.mubr.msk.bf16.vlgmr.msra.gmra.mrb[12].mxu0 %vm73_vm1, %v854_v12 }
 0x568   :  { %663 = vmatprep.mubr.msk.bf16.mxu0 %vm763_vm0, %v762_v0 }
 0x63a   :  { %v383_v59 = vpop.f32.mrb[12].mxu0 }
 0x63b   :  { %v653_v61 = vpop.f32.mrb[13].mxu0  ;;  %v384_v63 = vadd.f32 %v383_v59, %v347_v58 }
 0x63c   :  { %v386_v62 = vpop.f32.mrb[14].mxu0 }
 0x63d   :  { %v387_v1 = vadd.f32 %v386_v62, %v348_v60  ;;  %v654_v2 = vpop.f32.mrb[15].mxu0 }
 0x63f   :  { %v390_v3 = vpack.c.bf16 %v387_v1, %v384_v63 }
 0x641   :  { %656 = vmatpush3.bf16.msra.mxu1 %v390_v3 }
 0x642   :  { %667 = vmatprep.subr.bf16.mxu1 %v762_v0 }
 0x644   :  { %658 = vmatmul.mubr.msk.bf16.vlgmr.msra.gmra.mrb[12].mxu1 %vm73_vm1, %v854_v12 }
 0x645   :  { %669 = vmatprep.mubr.msk.bf16.mxu1 %vm763_vm0, %v762_v0 }
 0x717   :  { %v428_v5 = vpop.f32.mrb[12].mxu1 }
 0x718   :  { %v659_v7 = vpop.f32.mrb[13].mxu1  ;;  %v429_v9 = vadd.f32 %v428_v5, %v392_v4 }
 0x719   :  { %v431_v8 = vpop.f32.mrb[14].mxu1 }
 0x71a   :  { %v432_v10 = vadd.f32 %v431_v8, %v393_v6  ;;  %v660_v11 = vpop.f32.mrb[15].mxu1 }
 0x71c   :  { %v435_v13 = vpack.c.bf16 %v432_v10, %v429_v9 }
 0x71e   :  { %662 = vmatpush3.bf16.msra.mxu0 %v435_v13 }
 0x71f   :  { %673 = vmatprep.subr.bf16.mxu0 %v762_v0 }
 0x721   :  { %664 = vmatmul.mubr.msk.bf16.vlgmr.msra.gmra.mrb[16].mxu0 %vm73_vm1, %v854_v12 }
 0x722   :  { %675 = vmatprep.mubr.msk.bf16.mxu0 %vm763_vm0, %v762_v0 }
 0x7f4   :  { %v473_v15 = vpop.f32.mrb[16].mxu0 }
 0x7f5   :  { %v665_v17 = vpop.f32.mrb[17].mxu0  ;;  %v474_v19 = vadd.f32 %v473_v15, %v437_v14 }
 0x7f6   :  { %v476_v18 = vpop.f32.mrb[18].mxu0 }
 0x7f7   :  { %v477_v20 = vadd.f32 %v476_v18, %v438_v16  ;;  %v666_v21 = vpop.f32.mrb[19].mxu0 }
 0x7f9   :  { %v480_v22 = vpack.c.bf16 %v477_v20, %v474_v19 }
 0x7fb   :  { %668 = vmatpush3.bf16.msra.mxu1 %v480_v22 }
 0x7fe   :  { %670 = vmatmul.mubr.msk.bf16.vlgmr.msra.gmra.mrb[16].mxu1 %vm73_vm1, %v854_v12 }
 0x8d1   :  { %v518_v24 = vpop.f32.mrb[16].mxu1 }
 0x8d2   :  { %v671_v26 = vpop.f32.mrb[17].mxu1  ;;  %v519_v28 = vadd.f32 %v518_v24, %v482_v23 }
 0x8d3   :  { %v521_v27 = vpop.f32.mrb[18].mxu1 }
 0x8d4   :  { %v522_v0 = vadd.f32 %v521_v27, %v483_v25  ;;  %v672_v29 = vpop.f32.mrb[19].mxu1 }
 0x8d6   :  { %v525_v30 = vpack.c.bf16 %v522_v0, %v519_v28 }
 0x8d8   :  { %674 = vmatpush3.bf16.msra.mxu0 %v525_v30 }
 0x8db   :  { %676 = vmatmul.mubr.msk.bf16.vlgmr.msra.gmra.mrb[20].mxu0 %vm73_vm1, %v854_v12 }
 0x9ae   :  { %v563_v32 = vpop.f32.mrb[20].mxu0 }
 0x9af   :  { %v564_v34 = vadd.f32 %v563_v32, %v527_v31  ;;  %v677_v35 = vpop.f32.mrb[21].mxu0 }
 0x9b0   :  { %v566_v36 = vpop.f32.mrb[22].mxu0 }
 0x9b1   :  { %571 = vst.msk [vmem:[%s910_s4] sm:$0xff] %vm570_vm2, %v564_v34  ;;  %v567_v37 = vadd.f32 %v566_v36, %v528_v33  ;;  %v678_v38 = vpop.f32.mrb[23].mxu0 }
 0x9b3   :  { %572 = vst.msk [vmem:[%s910_s4 + $0x8] sm:$0xff] %vm570_vm2, %v567_v37 }
 0x9b4   :  { %577 = vsyncpa [#allocation3], 1 }
 0x9b5   :  { %578 = vsyncpa [#allocation5], 1 }

</bundles_post_ra>
